<compile_context>
chip_gen: v6e
topology: v6e:2x2x1
jax: 0.10.0
libtpu: 0.0.40
codegen_flags: <defaults>
</compile_context>

<pallas_src>
import jax
import jax.numpy as jnp
import numpy as np
from jax.experimental import pallas as pl
from jax.experimental.pallas import tpu as pltpu


def combiner_kernel(x_ref, ctx_ref, w_ref, b_ref, o_ref):
    # x_ref:   (1, 1, C, HW)  frame 0 (grid f==0) or frame t-1 (f==1) of x
    # ctx_ref: (1, C, HW)     context frame f (selected by its index_map)
    # w_ref:   (C, C)         conv1x1 weight, (c_out, c_in)
    # b_ref:   (C, 1)         conv1x1 bias
    # o_ref:   (1, 1, C, HW)  aliased with x (only these 2 blocks are written)
    x = x_ref[0, 0].astype(jnp.float32)                     # (C, HW)
    c, hw = x.shape
    ctx = ctx_ref[...].reshape(c, hw).astype(jnp.float32)   # (C, HW)
    wmat = w_ref[...].astype(jnp.float32)                   # (C, C)

    # fused x + bias + conv(ctx); write output once (no copy-then-RMW).
    acc = x + b_ref[...].astype(jnp.float32)                # bias (C,1) bcast

    if c <= 16:
        # tiny channel count: keep the 1x1 conv on the VPU (unrolled FMAs)
        for i in range(c):
            acc = acc + wmat[:, i:i + 1] * ctx[i:i + 1, :]
    else:
        acc = acc + jnp.dot(wmat, ctx, preferred_element_type=jnp.float32)

    o_ref[0, 0] = acc.astype(o_ref.dtype)


def combiner_forward(x_nchw, context_bclhw, conv_weight, conv_bias, b):
    """x_nchw: (b*t, c, h, w); context_bclhw: (b, c, l, h, w);
    conv_weight: (c_out, c_in, 1, 1); conv_bias: (c_out,)."""
    bt, c, h, w = x_nchw.shape
    t = bt // b
    assert t >= 2, "kernel assumes distinct first/last frames (t >= 2)"
    hw = h * w
    l = context_bclhw.shape[2]

    # Free reshapes only -- no transposes. Channels-first; hw is the lane dim.
    x = x_nchw.reshape(b, t, c, hw)

    if hw % 128 == 0:
        # Frame f of context lives at lane-block f of this (free) reshape, so
        # the index_map alone selects the frame -- no XLA slicing/copies.
        ctx = context_bclhw.reshape(b, c, l * hw)
        ctx_spec = pl.BlockSpec((1, c, hw), lambda i, f: (i, 0, f))
    else:
        # Fallback for non-128-multiple spatial: materialize the 2 used frames.
        ctx = jnp.stack(
            [context_bclhw[:, :, 0].reshape(b, c, hw),
             context_bclhw[:, :, 1].reshape(b, c, hw)], axis=1)   # (b,2,c,hw)
        ctx_spec = pl.BlockSpec((1, 1, c, hw), lambda i, f: (i, f, 0, 0))

    w_oi = conv_weight[:, :, 0, 0]          # (c_out, c_in)
    bias = conv_bias.reshape(c, 1)

    # grid axis f in {0,1} -> x/output frame index f*(t-1) (i.e. 0 or t-1)
    frame_map = lambda i, f: (i, f * (t - 1), 0, 0)

    out = pl.pallas_call(
        combiner_kernel,
        out_shape=jax.ShapeDtypeStruct((b, t, c, hw), x.dtype),
        grid_spec=pltpu.PrefetchScalarGridSpec(
            num_scalar_prefetch=0,
            grid=(b, 2),
            in_specs=[
                pl.BlockSpec((1, 1, c, hw), frame_map),     # x (aliased out)
                ctx_spec,                                   # context frame f
                pl.BlockSpec((c, c), lambda i, f: (0, 0)),  # weight
                pl.BlockSpec((c, 1), lambda i, f: (0, 0)),  # bias
            ],
            out_specs=pl.BlockSpec((1, 1, c, hw), frame_map),
        ),
        # x is aliased to the output: blocks never written by the kernel (the
        # middle frames) keep the donated input contents -> pure pass-through
        # with zero kernel HBM traffic for them.
        input_output_aliases={0: 0},
        compiler_params=pltpu.CompilerParams(
            dimension_semantics=("parallel", "parallel")),
    )(x, ctx, w_oi, bias)

    return out.reshape(bt, c, h, w)


combiner_forward_jit = jax.jit(combiner_forward, static_argnums=(4,))


def combiner_reference(x_nchw, context_bclhw, conv_weight, conv_bias, b):
    """Pure-JAX mirror of Combiner._forward (NCHW, same semantics)."""
    bt, c, h, w = x_nchw.shape
    t = bt // b
    l = context_bclhw.shape[2]
    ctx = context_bclhw.transpose(0, 2, 1, 3, 4).reshape(b * l, c, h, w)
    conv = jnp.einsum('oc,nchw->nohw', conv_weight[:, :, 0, 0], ctx) \
        + conv_bias[None, :, None, None]
    conv = conv.reshape(b, l, c, h, w).transpose(0, 2, 1, 3, 4)    # (b, c, l, h, w)
    xr = x_nchw.reshape(b, t, c, h, w).transpose(0, 2, 1, 3, 4)    # (b, c, t, h, w)
    xr = xr.at[:, :, 0].add(conv[:, :, 0])
    xr = xr.at[:, :, -1].add(conv[:, :, 1])
    return xr.transpose(0, 2, 1, 3, 4).reshape(bt, c, h, w)


if __name__ == "__main__":
    b, t, c, h, w, l = 2, 4, 4, 16, 16, 2
    bt = b * t

    key = jax.random.PRNGKey(0)
    kx, kctx, kw, kb = jax.random.split(key, 4)
    x = jax.random.normal(kx, (bt, c, h, w), dtype=jnp.float32)
    context = jax.random.normal(kctx, (b, c, l, h, w), dtype=jnp.float32)
    conv_weight = 0.1 * jax.random.normal(kw, (c, c, 1, 1), dtype=jnp.float32)
    conv_bias = 0.1 * jax.random.normal(kb, (c,), dtype=jnp.float32)

    out = combiner_forward_jit(x, context, conv_weight, conv_bias, b)
    out = jax.block_until_ready(out)

    ref = combiner_reference(x, context, conv_weight, conv_bias, b)
    np.testing.assert_allclose(np.asarray(out), np.asarray(ref),
                               rtol=1e-5, atol=1e-5)
    print("KERNEL_OK")
</pallas_src>

<mosaic_0001>
module attributes {stable_mosaic.version = 11 : i64} {
  func.func @combiner_kernel(%arg0: i32, %arg1: i32, %arg2: memref<1x1x4x256xf32, #tpu.memory_space<vmem>>, %arg3: memref<1x4x256xf32, #tpu.memory_space<vmem>>, %arg4: memref<4x4xf32, #tpu.memory_space<vmem>>, %arg5: memref<4x1xf32, #tpu.memory_space<vmem>>, %arg6: memref<1x1x4x256xf32, #tpu.memory_space<vmem>>) attributes {dimension_semantics = [#tpu.dimension_semantics<parallel>, #tpu.dimension_semantics<parallel>], iteration_bounds = array<i64: 2, 2>, scalar_prefetch = 0 : i64, scratch_operands = 0 : i64, tpu.core_type = #tpu.core_type<tc>, window_params = [{transform_indices = @transform_0, window_bounds = array<i64: 1, 1, 4, 256>}, {transform_indices = @transform_1, window_bounds = array<i64: 1, 4, 256>}, {pipeline_mode = #tpu.pipeline_mode<synchronous>, transform_indices = @transform_2, window_bounds = array<i64: 4, 4>}, {pipeline_mode = #tpu.pipeline_mode<synchronous>, transform_indices = @transform_3, window_bounds = array<i64: 4, 1>}, {transform_indices = @transform_4, window_bounds = array<i64: 1, 1, 4, 256>}]} {
    %c0 = arith.constant 0 : index
    %c0_0 = arith.constant 0 : index
    %c0_1 = arith.constant 0 : index
    %c0_2 = arith.constant 0 : index
    %0 = vector.load %arg2[%c0, %c0_0, %c0_1, %c0_2] : memref<1x1x4x256xf32, #tpu.memory_space<vmem>>, vector<1x1x4x256xf32>
    %1 = vector.shape_cast %0 : vector<1x1x4x256xf32> to vector<4x256xf32>
    %c0_3 = arith.constant 0 : index
    %c0_4 = arith.constant 0 : index
    %c0_5 = arith.constant 0 : index
    %2 = vector.load %arg3[%c0_3, %c0_4, %c0_5] : memref<1x4x256xf32, #tpu.memory_space<vmem>>, vector<1x4x256xf32>
    %3 = vector.shape_cast %2 : vector<1x4x256xf32> to vector<4x256xf32>
    %c0_6 = arith.constant 0 : index
    %c0_7 = arith.constant 0 : index
    %4 = vector.load %arg4[%c0_6, %c0_7] : memref<4x4xf32, #tpu.memory_space<vmem>>, vector<4x4xf32>
    %c0_8 = arith.constant 0 : index
    %c0_9 = arith.constant 0 : index
    %5 = vector.load %arg5[%c0_8, %c0_9] : memref<4x1xf32, #tpu.memory_space<vmem>>, vector<4x1xf32>
    %6 = vector.broadcast %5 : vector<4x1xf32> to vector<4x256xf32>
    %7 = arith.addf %1, %6 : vector<4x256xf32>
    %8 = vector.extract_strided_slice %4 {offsets = [0, 0], sizes = [4, 1], strides = [1, 1]} : vector<4x4xf32> to vector<4x1xf32>
    %9 = vector.extract_strided_slice %3 {offsets = [0, 0], sizes = [1, 256], strides = [1, 1]} : vector<4x256xf32> to vector<1x256xf32>
    %10 = vector.broadcast %8 : vector<4x1xf32> to vector<4x256xf32>
    %11 = vector.broadcast %9 : vector<1x256xf32> to vector<4x256xf32>
    %12 = arith.mulf %10, %11 : vector<4x256xf32>
    %13 = arith.addf %7, %12 : vector<4x256xf32>
    %14 = vector.extract_strided_slice %4 {offsets = [0, 1], sizes = [4, 1], strides = [1, 1]} : vector<4x4xf32> to vector<4x1xf32>
    %15 = vector.extract_strided_slice %3 {offsets = [1, 0], sizes = [1, 256], strides = [1, 1]} : vector<4x256xf32> to vector<1x256xf32>
    %16 = vector.broadcast %14 : vector<4x1xf32> to vector<4x256xf32>
    %17 = vector.broadcast %15 : vector<1x256xf32> to vector<4x256xf32>
    %18 = arith.mulf %16, %17 : vector<4x256xf32>
    %19 = arith.addf %13, %18 : vector<4x256xf32>
    %20 = vector.extract_strided_slice %4 {offsets = [0, 2], sizes = [4, 1], strides = [1, 1]} : vector<4x4xf32> to vector<4x1xf32>
    %21 = vector.extract_strided_slice %3 {offsets = [2, 0], sizes = [1, 256], strides = [1, 1]} : vector<4x256xf32> to vector<1x256xf32>
    %22 = vector.broadcast %20 : vector<4x1xf32> to vector<4x256xf32>
    %23 = vector.broadcast %21 : vector<1x256xf32> to vector<4x256xf32>
    %24 = arith.mulf %22, %23 : vector<4x256xf32>
    %25 = arith.addf %19, %24 : vector<4x256xf32>
    %26 = vector.extract_strided_slice %4 {offsets = [0, 3], sizes = [4, 1], strides = [1, 1]} : vector<4x4xf32> to vector<4x1xf32>
    %27 = vector.extract_strided_slice %3 {offsets = [3, 0], sizes = [1, 256], strides = [1, 1]} : vector<4x256xf32> to vector<1x256xf32>
    %28 = vector.broadcast %26 : vector<4x1xf32> to vector<4x256xf32>
    %29 = vector.broadcast %27 : vector<1x256xf32> to vector<4x256xf32>
    %30 = arith.mulf %28, %29 : vector<4x256xf32>
    %31 = arith.addf %25, %30 : vector<4x256xf32>
    %c0_10 = arith.constant 0 : index
    %c0_11 = arith.constant 0 : index
    %c0_12 = arith.constant 0 : index
    %c0_13 = arith.constant 0 : index
    %32 = vector.load %arg6[%c0_10, %c0_11, %c0_12, %c0_13] : memref<1x1x4x256xf32, #tpu.memory_space<vmem>>, vector<1x1x4x256xf32>
    %33 = vector.shape_cast %32 : vector<1x1x4x256xf32> to vector<4x256xf32>
    %34 = vector.shape_cast %31 : vector<4x256xf32> to vector<1x1x4x256xf32>
    tpu.vector_store %arg6[%c0_10, %c0_11, %c0_12, %c0_13], %34 {strides = array<i32>} : memref<1x1x4x256xf32, #tpu.memory_space<vmem>>, vector<1x1x4x256xf32>,
    return
  }
  func.func @transform_0(%arg0: i32, %arg1: i32) -> (i32, i32, i32, i32) {
    %c3_i32 = arith.constant 3 : i32
    %0 = arith.muli %arg1, %c3_i32 : i32
    %c0_i32 = arith.constant 0 : i32
    %c0_i32_0 = arith.constant 0 : i32
    %c0_i32_1 = arith.constant 0 : i32
    return %arg0, %0, %c0_i32, %c0_i32_0 : i32, i32, i32, i32
  }
  func.func @transform_1(%arg0: i32, %arg1: i32) -> (i32, i32, i32) {
    %c0_i32 = arith.constant 0 : i32
    %c0_i32_0 = arith.constant 0 : i32
    return %arg0, %c0_i32, %arg1 : i32, i32, i32
  }
  func.func @transform_2(%arg0: i32, %arg1: i32) -> (i32, i32) {
    %c0_i32 = arith.constant 0 : i32
    %c0_i32_0 = arith.constant 0 : i32
    %c0_i32_1 = arith.constant 0 : i32
    return %c0_i32, %c0_i32_0 : i32, i32
  }
  func.func @transform_3(%arg0: i32, %arg1: i32) -> (i32, i32) {
    %c0_i32 = arith.constant 0 : i32
    %c0_i32_0 = arith.constant 0 : i32
    %c0_i32_1 = arith.constant 0 : i32
    return %c0_i32, %c0_i32_0 : i32, i32
  }
  func.func @transform_4(%arg0: i32, %arg1: i32) -> (i32, i32, i32, i32) {
    %c3_i32 = arith.constant 3 : i32
    %0 = arith.muli %arg1, %c3_i32 : i32
    %c0_i32 = arith.constant 0 : i32
    %c0_i32_0 = arith.constant 0 : i32
    %c0_i32_1 = arith.constant 0 : i32
    return %arg0, %0, %c0_i32, %c0_i32_0 : i32, i32, i32, i32
  }
}

</mosaic_0001>

<bundles_post_ra>
// kernel: combiner_forward.1
= control target key start
LH: loop header
LB: loop body
LE: loop exit
PB: predicated region body
PF: predicated region fallthrough
CT: control target
= control target key end

     0   :  { %s670_s15 = smov 0   ;;  %s672_s16 = smov 0   ;;  %s745_s0 = inlined_call_operand.vmem [shape: f32[2,4,4,256], index: 0, kind: input, shape index: {}, may-alias: {0,4}]   ;;  %s746_s1 = inlined_call_operand.vmem [shape: f32[2,4,512], index: 1, kind: input, shape index: {}]   ;;  %s747_s2 = inlined_call_operand.vmem [shape: f32[4,4], index: 2, kind: input, shape index: {}]   ;;  %s748_s3 = inlined_call_operand.vmem [shape: f32[4,1], index: 3, kind: input, shape index: {}]   ;;  %s749_s4 = inlined_call_operand.vmem [shape: f32[2,4,4,256], index: 4, kind: output, shape index: {}, may-alias: {0,4}]  }
   0x1   :  { %s674_s17 = smov 0   ;;  %s676_s18 = smov 0  }
   0x2   :  { %s678_s19 = smov 0  }
   0x3 LB: > { %s23_s20 = sadd.s32 1, %s630_s17  ;;  %s26_s21 = sadd.s32 1, %s634_s18  ;;  %s638_s19 = sphi %s678_s19, %s14_s19   ;;  %s634_s18 = sphi %s676_s18, %s753_s18   ;;  %s630_s17 = sphi %s674_s17, %s752_s17   ;;  %s626_s16 = sphi %s672_s16, %s751_s16   ;;  %s622_s15 = sphi %s670_s15, %s750_s15  }
   0x4   : > { %p24_p0 = scmp.ge.s32.totalorder %s23_s20, 2  ;;  %p539_p1 = scmp.ge.s32.totalorder %s638_s19, 1 }
   0x5   : > { %p205_p2 = scmp.lt.s32.totalorder %s638_s19, 5 }
   0x6   : > { %s755_s20 = smov (%p24_p0, %s23_s20), 0  ;;  %s757_s21 = smov (!%p24_p0, %s26_s21), %s634_s18 }
   0x7   : > { %p206_p3 = pnand %p539_p1, %p205_p2  ;;  %p28_p4 = scmp.ge.s32.totalorder %s757_s21, 2 }
   0x8   : > { %p251_p5 = scmp.lt.s32.totalorder (!%p206_p3), %s626_s16, 1  ;;  %s543_s26 = sshll.u32 (!%p206_p3), %s622_s15, 1 }
   0x9   : > { %s759_s21 = smov (%p28_p4, %s757_s21), 0  ;;  %209 = sbr.rel (%p206_p3) target bundleno = 157 (0x9d), region = 36 }
   0xa   : > { %p264_p6 = scmp.lt.s32.totalorder (!%p206_p3), %s543_s26, 3  ;;  %s250_s27 = smul.u32 (!%p206_p3), 3, %s622_s15 }
   0xc   : > { %p253_p7 = scmp.lt.s32.totalorder (!%p206_p3), %s250_s27, 3 }
   0xe   : > { %v285_v0 = vld [vmem:[%s748_s3] sm:$0xf]  ;;  %v640_v2 = vmov 0   ;;  %v641_v3 = vmov 1   ;;  %v642_v4 = vmov 2   ;;  %v643_v5 = vmov 3  }
   0xf   : > { %v284_v1 = vld [vmem:[%s747_s2] sm:$0xf]  ;;  %596 = vset.pattern.permute.xlu0 %v640_v2  ;;  %597 = vset.pattern.permute.xlu1 %v641_v3  ;;  %s761_s16 = smov (!%p251_p5, %s626_s16), 1  ;;  %s763_s26 = smov (!%p264_p6, %s543_s26), 3  ;;  %v293_v6 = vlaneseq  ;;  %v644_v8 = vmov 839922192  }
  0x10   : > { %288 = vperm.xlu0 %596, %v285_v0   ;;  %331 = vperm.xlu1 %597, %v284_v1   ;;  %s544_s28 = sshll.u32 %s761_s16, 2  ;;  %s765_s27 = smov (!%p253_p7, %s250_s27), 3  ;;  %v291_v9 = vunpack.c.l.s4 %v644_v8 }
  0x11   : > { %s267_s29 = sadd.s32 %s544_s28, %s763_s26  ;;  %v294_v7 = vshrl.u32 %v293_v6, 7  ;;  %s540_s8 = sshll.u32 %s765_s27, 1 }
  0x12   : > { %s545_s30 = sshll.u32 %s267_s29, 2  ;;  %s541_s9 = sshll.u32 %s761_s16, 3  ;;  %v292_v17 = vunpack.c.0.s8 %v291_v9 }
  0x13   : > { %s269_s7 = scalar_lea.vmem %s746_s1, %s545_s30  ;;  %v336_v10 = vsub.s32 1, %v294_v7  ;;  %v340_v11 = vsub.s32 5, %v294_v7  ;;  %v307_v12 = vsub.s32 0, %v294_v7  ;;  %v311_v13 = vsub.s32 4, %v294_v7  ;;  %s717_s10 = sadd.s32 %s541_s9, %s540_s8 }
  0x14   : > { %301 = vperm.xlu0 %596, %v284_v1   ;;  %598 = vset.pattern.permute.xlu1 %v642_v4  ;;  %v283_v14 = vld [vmem:[%s269_s7] sm:$0xff]  ;;  %v365_v15 = vsub.s32 2, %v294_v7  ;;  %v369_v16 = vsub.s32 6, %v294_v7  ;;  %s542_s11 = sshll.u32 %s717_s10, 2  ;;  %v394_v24 = vsub.s32 3, %v294_v7  ;;  %v398_v25 = vsub.s32 7, %v294_v7 }
  0x15   : > { %360 = vperm.xlu1 %598, %v284_v1   ;;  %v337_v18 = vrot.slane %v283_v14, %v336_v10  ;;  %v341_v19 = vrot.slane %v283_v14, %v340_v11  ;;  %v308_v20 = vrot.slane %v283_v14, %v307_v12  ;;  %v312_v21 = vrot.slane %v283_v14, %v311_v13  ;;  %s259_s14 = scalar_lea.vmem %s745_s0, %s542_s11  ;;  %s280_s22 = scalar_lea.vmem %s749_s4, %s542_s11 }
  0x16   : > { %v366_v22 = vrot.slane %v283_v14, %v365_v15  ;;  %v370_v23 = vrot.slane %v283_v14, %v369_v16  ;;  %v295_v26 = vsub.s32 %v292_v17, %v294_v7  ;;  %v395_v35 = vrot.slane %v283_v14, %v394_v24  ;;  %v282_v38 = vld [vmem:[%s259_s14] sm:$0xff] }
  0x17   : > { %v347_v29 = vrot.slane %v337_v18, %v336_v10  ;;  %v351_v30 = vrot.slane %v341_v19, %v336_v10  ;;  %v318_v31 = vrot.slane %v308_v20, %v307_v12  ;;  %v322_v32 = vrot.slane %v312_v21, %v307_v12 }
  0x18   : > { %599 = vset.pattern.permute.xlu0 %v643_v5  ;;  %v376_v33 = vrot.slane %v366_v22, %v365_v15  ;;  %v380_v34 = vrot.slane %v370_v23, %v365_v15  ;;  %v399_v36 = vrot.slane %v283_v14, %v398_v25  ;;  %v405_v47 = vrot.slane %v395_v35, %v394_v24 }
  0x19   : > { %389 = vperm.xlu0 %599, %v284_v1  }
  0x1a   : > { %v409_v48 = vrot.slane %v399_v36, %v394_v24 }
  0x8b   : > { %v289_v27 = vpop.permute.xlu0 %288  ;;  %v332_v28 = vpop.permute.xlu1 %331 }
  0x8c   : > { %v296_v37 = vrot.slane %v289_v27, %v295_v26  ;;  %v352_v40 = vmul.f32 %v347_v29, %v332_v28  ;;  %v353_v41 = vmul.f32 %v351_v30, %v332_v28 }
  0x8e   : > { %v298_v49 = vadd.f32 %v296_v37, %v282_v38  ;;  %v356_v51 = vcombine.low %v352_v40, %v353_v41 }
  0x8f   : > { %v302_v39 = vpop.permute.xlu0 %301 }
  0x90   : > { %v323_v42 = vmul.f32 %v318_v31, %v302_v39  ;;  %v324_v43 = vmul.f32 %v322_v32, %v302_v39  ;;  %v361_v44 = vpop.permute.xlu1 %360 }
  0x91   : > { %v381_v45 = vmul.f32 %v376_v33, %v361_v44  ;;  %v382_v46 = vmul.f32 %v380_v34, %v361_v44 }
  0x92   : > { %v327_v50 = vcombine.low %v323_v42, %v324_v43 }
  0x93   : > { %v385_v53 = vcombine.low %v381_v45, %v382_v46 }
  0x94   : > { %v329_v52 = vadd.f32 %v327_v50, %v298_v49  ;;  %v390_v54 = vpop.permute.xlu0 %389 }
  0x95   : > { %v410_v55 = vmul.f32 %v405_v47, %v390_v54  ;;  %v411_v56 = vmul.f32 %v409_v48, %v390_v54 }
  0x96   : > { %v358_v57 = vadd.f32 %v356_v51, %v329_v52 }
  0x97   : > { %v414_v58 = vcombine.low %v410_v55, %v411_v56 }
  0x98   : > { %v387_v59 = vadd.f32 %v385_v53, %v358_v57 }
  0x9a   : > { %v416_v60 = vadd.f32 %v414_v58, %v387_v59 }
  0x9c   : > { %417 = vst [vmem:[%s280_s22] sm:$0xff] %v416_v60 }
  0x9d PF: > { %s14_s19 = sadd.s32 1, %s638_s19   ;;  %s750_s15 = smov %s630_s17 }
  0x9e   : > { %p11_p8 = scmp.ge.s32.totalorder %s14_s19, 6   ;;  %s751_s16 = smov %s634_s18 }
  0x9f   : > { %s752_s17 = smov %s755_s20  ;;  %s753_s18 = smov %s759_s21 }
  0xa0   :  { %13 = sbr.rel (!%p11_p8) target bundleno = 3 (0x3), region = 69 }

</bundles_post_ra>
